<compile_context>
chip_gen: v7x
topology: tpu7x:2x2x1
jax: 0.10.0
libtpu: 0.0.40
codegen_flags: <defaults>
</compile_context>

<pallas_src>
import functools

import jax
import jax.numpy as jnp
from jax.experimental import pallas as pl
from jax.experimental.pallas import tpu as pltpu

HIDDEN_PAD = 128   # pad hidden width to a full vreg lane width
ACTION_PAD = 128   # pad action logits so output stores are lane-dense


def actor_mlp_kernel(x_ref, w1_ref, b1_ref, w2_ref, b2_ref, w3_ref, b3_ref,
                     probs_ref, *, n_actions):
    """One batch tile: 2x (Linear + ReLU) -> Linear -> masked softmax over actions."""
    x = x_ref[...]                                               # (TILE_B, S) bf16

    # Hidden layer 1: bf16 MXU matmul, f32 accumulate; bias/ReLU in f32 (v5e-safe).
    h1 = jnp.dot(x, w1_ref[...], preferred_element_type=jnp.float32) + b1_ref[...]
    h1 = jnp.maximum(h1, 0.0).astype(jnp.bfloat16)

    # Hidden layer 2.
    h2 = jnp.dot(h1, w2_ref[...], preferred_element_type=jnp.float32) + b2_ref[...]
    h2 = jnp.maximum(h2, 0.0).astype(jnp.bfloat16)

    # Discrete action layer: Linear -> softmax over the (padded) action lanes.
    logits = jnp.dot(h2, w3_ref[...], preferred_element_type=jnp.float32) + b3_ref[...]

    # Padded lanes (>= n_actions) must be -inf so exp(pad) == 0 and the softmax
    # normalization matches the unpadded network exactly.
    lane = jax.lax.broadcasted_iota(jnp.int32, logits.shape, dimension=1)
    logits = jnp.where(lane < n_actions, logits, -jnp.inf)

    m = jnp.max(logits, axis=-1, keepdims=True)
    e = jnp.exp(logits - m)
    denom = jnp.sum(e, axis=-1, keepdims=True)
    probs_ref[...] = (e * pl.reciprocal(denom, approx=True)).astype(probs_ref.dtype)
    # TODO(synk): legal_actions masking not wired; this matches the legal_actions=None
    #             path of DiscreteActionLayer.


def _round_up(v, m):
    return ((v + m - 1) // m) * m


def actor_forward(x, params, n_actions, *, tile_b=512):
    """Batch-tiled pallas_call; weights stay VMEM-resident, x/probs are streamed."""
    w1, b1, w2, b2, w3, b3 = params
    B, S = x.shape
    h_pad = w1.shape[1]
    a_pad = w3.shape[1]

    # Effective batch tile: multiple of 8, no larger than needed, capped at tile_b
    # (512 keeps double-buffered tiles + f32 intermediates well under v7x's 32 MiB
    # scoped VMEM default).
    tile = min(tile_b, _round_up(B, 8))
    b_pad = _round_up(B, tile)
    if b_pad != B:
        x = jnp.pad(x, ((0, b_pad - B), (0, 0)))
    x = x.astype(jnp.bfloat16)   # halve HBM->VMEM traffic for the streamed activations

    grid = (b_pad // tile,)

    weight_bytes = sum(int(p.size) * p.dtype.itemsize for p in params)
    cost = pl.CostEstimate(
        flops=2 * b_pad * (S * h_pad + h_pad * h_pad + h_pad * a_pad) + 6 * b_pad * a_pad,
        transcendentals=b_pad * a_pad,
        bytes_accessed=b_pad * S * 2 + b_pad * a_pad * 4 + weight_bytes,
    )

    def resident(arr):
        # Constant index_map: DMA'd once, resident in VMEM across all grid steps.
        return pl.BlockSpec(arr.shape, lambda i: (0, 0))

    out = pl.pallas_call(
        functools.partial(actor_mlp_kernel, n_actions=n_actions),
        out_shape=jax.ShapeDtypeStruct((b_pad, a_pad), jnp.float32),
        grid=grid,
        in_specs=[pl.BlockSpec((tile, S), lambda i: (i, 0)),
                  resident(w1), resident(b1),
                  resident(w2), resident(b2),
                  resident(w3), resident(b3)],
        out_specs=pl.BlockSpec((tile, a_pad), lambda i: (i, 0)),
        compiler_params=pltpu.CompilerParams(
            dimension_semantics=("parallel",)),
        cost_estimate=cost,
    )(x, w1, b1, w2, b2, w3, b3)

    return out[:B, :n_actions]


def init_params(key, state_size, hidden, n_actions,
                *, hidden_pad=HIDDEN_PAD, action_pad=ACTION_PAD):
    """torch.nn.Linear-style init (U[-1/sqrt(fan_in), +]) on the *logical* shapes,
    zero-padded to lane-friendly widths. Weights stored bf16, biases f32."""
    ks = jax.random.split(key, 6)

    def lin(kw, kb, fan_in, fan_out, in_pad, out_pad):
        bound = 1.0 / float(fan_in) ** 0.5
        w = jax.random.uniform(kw, (fan_in, fan_out), jnp.float32, -bound, bound)
        b = jax.random.uniform(kb, (1, fan_out), jnp.float32, -bound, bound)
        w_p = jnp.zeros((in_pad, out_pad), jnp.float32).at[:fan_in, :fan_out].set(w)
        b_p = jnp.zeros((1, out_pad), jnp.float32).at[:, :fan_out].set(b)
        return w_p.astype(jnp.bfloat16), b_p

    w1, b1 = lin(ks[0], ks[1], state_size, hidden, state_size, hidden_pad)
    w2, b2 = lin(ks[2], ks[3], hidden, hidden, hidden_pad, hidden_pad)
    w3, b3 = lin(ks[4], ks[5], hidden, n_actions, hidden_pad, action_pad)
    return (w1, b1, w2, b2, w3, b3)


def actor_forward_ref(x, params, n_actions):
    """Pure-JAX f32 reference (padded weight rows/cols are zero, so this equals the
    logical 16->32->32->n_actions network)."""
    w1, b1, w2, b2, w3, b3 = [p.astype(jnp.float32) for p in params]
    h = jnp.maximum(x @ w1 + b1, 0.0)
    h = jnp.maximum(h @ w2 + b2, 0.0)
    logits = (h @ w3 + b3)[:, :n_actions]
    return jax.nn.softmax(logits, axis=-1)


if __name__ == "__main__":
    key = jax.random.PRNGKey(0)
    kx, kp, kx2 = jax.random.split(key, 3)

    state_size = 16
    hidden = 32
    n_actions = 6
    params = init_params(kp, state_size, hidden, n_actions)

    # Case 1: single-tile batch.
    batch = 64
    x = jax.random.normal(kx, (batch, state_size), jnp.float32)
    probs = jax.block_until_ready(actor_forward(x, params, n_actions))
    ref = actor_forward_ref(x, params, n_actions)
    assert probs.shape == (batch, n_actions)
    assert jnp.allclose(probs, ref, atol=2e-2, rtol=0), float(jnp.max(jnp.abs(probs - ref)))
    assert jnp.allclose(jnp.sum(probs, axis=-1), 1.0, atol=5e-3)

    # Case 2: ragged batch with a multi-step (pipelined) batch grid.
    batch2 = 200
    x2 = jax.random.normal(kx2, (batch2, state_size), jnp.float32)
    probs2 = jax.block_until_ready(actor_forward(x2, params, n_actions, tile_b=64))
    ref2 = actor_forward_ref(x2, params, n_actions)
    assert probs2.shape == (batch2, n_actions)
    assert jnp.allclose(probs2, ref2, atol=2e-2, rtol=0), float(jnp.max(jnp.abs(probs2 - ref2)))
    assert jnp.allclose(jnp.sum(probs2, axis=-1), 1.0, atol=5e-3)

    print("KERNEL_OK")
</pallas_src>

<mosaic_0001>
module attributes {stable_mosaic.version = 11 : i64} {
  func.func @actor_mlp_kernel(%arg0: i32, %arg1: memref<64x16xbf16, #tpu.memory_space<vmem>>, %arg2: memref<16x128xbf16, #tpu.memory_space<vmem>>, %arg3: memref<1x128xf32, #tpu.memory_space<vmem>>, %arg4: memref<128x128xbf16, #tpu.memory_space<vmem>>, %arg5: memref<1x128xf32, #tpu.memory_space<vmem>>, %arg6: memref<128x128xbf16, #tpu.memory_space<vmem>>, %arg7: memref<1x128xf32, #tpu.memory_space<vmem>>, %arg8: memref<64x128xf32, #tpu.memory_space<vmem>>) attributes {dimension_semantics = [#tpu.dimension_semantics<parallel>], iteration_bounds = array<i64: 1>, scalar_prefetch = 0 : i64, scratch_operands = 0 : i64, tpu.core_type = #tpu.core_type<tc>, window_params = [{transform_indices = @transform_0, window_bounds = array<i64: 64, 16>}, {pipeline_mode = #tpu.pipeline_mode<synchronous>, transform_indices = @transform_1, window_bounds = array<i64: 16, 128>}, {pipeline_mode = #tpu.pipeline_mode<synchronous>, transform_indices = @transform_2, window_bounds = array<i64: 1, 128>}, {pipeline_mode = #tpu.pipeline_mode<synchronous>, transform_indices = @transform_3, window_bounds = array<i64: 128, 128>}, {pipeline_mode = #tpu.pipeline_mode<synchronous>, transform_indices = @transform_4, window_bounds = array<i64: 1, 128>}, {pipeline_mode = #tpu.pipeline_mode<synchronous>, transform_indices = @transform_5, window_bounds = array<i64: 128, 128>}, {pipeline_mode = #tpu.pipeline_mode<synchronous>, transform_indices = @transform_6, window_bounds = array<i64: 1, 128>}, {transform_indices = @transform_7, window_bounds = array<i64: 64, 128>}]} {
    %c0 = arith.constant 0 : index
    %c0_0 = arith.constant 0 : index
    %0 = vector.load %arg1[%c0, %c0_0] : memref<64x16xbf16, #tpu.memory_space<vmem>>, vector<64x16xbf16>
    %c0_1 = arith.constant 0 : index
    %c0_2 = arith.constant 0 : index
    %1 = vector.load %arg2[%c0_1, %c0_2] : memref<16x128xbf16, #tpu.memory_space<vmem>>, vector<16x128xbf16>
    %cst = arith.constant dense<0.000000e+00> : vector<64x128xf32>
    %2 = tpu.matmul %0, %1, %cst {dimension_numbers = #tpu.dot_dimension_numbers<[1], [0], [0], [1], [0, 0, 1, 1], [], []>} : vector<64x16xbf16>, vector<16x128xbf16>, vector<64x128xf32> -> vector<64x128xf32>
    %c0_3 = arith.constant 0 : index
    %c0_4 = arith.constant 0 : index
    %3 = vector.load %arg3[%c0_3, %c0_4] : memref<1x128xf32, #tpu.memory_space<vmem>>, vector<1x128xf32>
    %4 = vector.broadcast %3 : vector<1x128xf32> to vector<64x128xf32>
    %5 = arith.addf %2, %4 : vector<64x128xf32>
    %cst_5 = arith.constant 0.000000e+00 : f32
    %6 = vector.broadcast %cst_5 : f32 to vector<64x128xf32>
    %7 = arith.maximumf %5, %6 : vector<64x128xf32>
    %8 = arith.truncf %7 : vector<64x128xf32> to vector<64x128xbf16>
    %c0_6 = arith.constant 0 : index
    %c0_7 = arith.constant 0 : index
    %9 = vector.load %arg4[%c0_6, %c0_7] : memref<128x128xbf16, #tpu.memory_space<vmem>>, vector<128x128xbf16>
    %cst_8 = arith.constant dense<0.000000e+00> : vector<64x128xf32>
    %10 = tpu.matmul %8, %9, %cst_8 {dimension_numbers = #tpu.dot_dimension_numbers<[1], [0], [0], [1], [0, 0, 1, 1], [], []>} : vector<64x128xbf16>, vector<128x128xbf16>, vector<64x128xf32> -> vector<64x128xf32>
    %c0_9 = arith.constant 0 : index
    %c0_10 = arith.constant 0 : index
    %11 = vector.load %arg5[%c0_9, %c0_10] : memref<1x128xf32, #tpu.memory_space<vmem>>, vector<1x128xf32>
    %12 = vector.broadcast %11 : vector<1x128xf32> to vector<64x128xf32>
    %13 = arith.addf %10, %12 : vector<64x128xf32>
    %cst_11 = arith.constant 0.000000e+00 : f32
    %14 = vector.broadcast %cst_11 : f32 to vector<64x128xf32>
    %15 = arith.maximumf %13, %14 : vector<64x128xf32>
    %16 = arith.truncf %15 : vector<64x128xf32> to vector<64x128xbf16>
    %c0_12 = arith.constant 0 : index
    %c0_13 = arith.constant 0 : index
    %17 = vector.load %arg6[%c0_12, %c0_13] : memref<128x128xbf16, #tpu.memory_space<vmem>>, vector<128x128xbf16>
    %cst_14 = arith.constant dense<0.000000e+00> : vector<64x128xf32>
    %18 = tpu.matmul %16, %17, %cst_14 {dimension_numbers = #tpu.dot_dimension_numbers<[1], [0], [0], [1], [0, 0, 1, 1], [], []>} : vector<64x128xbf16>, vector<128x128xbf16>, vector<64x128xf32> -> vector<64x128xf32>
    %c0_15 = arith.constant 0 : index
    %c0_16 = arith.constant 0 : index
    %19 = vector.load %arg7[%c0_15, %c0_16] : memref<1x128xf32, #tpu.memory_space<vmem>>, vector<1x128xf32>
    %20 = vector.broadcast %19 : vector<1x128xf32> to vector<64x128xf32>
    %21 = arith.addf %18, %20 : vector<64x128xf32>
    %22 = tpu.iota {dimensions = array<i32: 1>} : vector<64x128xi32>
    %c6_i32 = arith.constant 6 : i32
    %23 = vector.broadcast %c6_i32 : i32 to vector<64x128xi32>
    %24 = arith.cmpi slt, %22, %23 : vector<64x128xi32>
    %cst_17 = arith.constant 0xFF800000 : f32
    %25 = vector.broadcast %cst_17 : f32 to vector<64x128xf32>
    %26 = arith.select %24, %21, %25 : vector<64x128xi1>, vector<64x128xf32>
    %cst_18 = arith.constant dense<0xFF800000> : vector<64xf32>
    %27 = vector.multi_reduction <maximumf>, %26, %cst_18 [1] : vector<64x128xf32> to vector<64xf32>
    %28 = vector.shape_cast %27 : vector<64xf32> to vector<64x1xf32>
    %29 = vector.broadcast %28 : vector<64x1xf32> to vector<64x128xf32>
    %30 = arith.subf %26, %29 : vector<64x128xf32>
    %31 = math.exp %30 : vector<64x128xf32>
    %cst_19 = arith.constant dense<0.000000e+00> : vector<64xf32>
    %32 = vector.multi_reduction <add>, %31, %cst_19 [1] : vector<64x128xf32> to vector<64xf32>
    %33 = vector.shape_cast %32 : vector<64xf32> to vector<64x1xf32>
    %34 = tpu.reciprocal %33 {approx = true} : vector<64x1xf32> -> vector<64x1xf32>
    %35 = vector.broadcast %34 : vector<64x1xf32> to vector<64x128xf32>
    %36 = arith.mulf %31, %35 : vector<64x128xf32>
    %c0_20 = arith.constant 0 : index
    %c0_21 = arith.constant 0 : index
    %37 = vector.load %arg8[%c0_20, %c0_21] : memref<64x128xf32, #tpu.memory_space<vmem>>, vector<64x128xf32>
    tpu.vector_store %arg8[%c0_20, %c0_21], %36 {strides = array<i32>} : memref<64x128xf32, #tpu.memory_space<vmem>>, vector<64x128xf32>,
    return
  }
  func.func @transform_0(%arg0: i32) -> (i32, i32) {
    %c0_i32 = arith.constant 0 : i32
    %c0_i32_0 = arith.constant 0 : i32
    return %arg0, %c0_i32 : i32, i32
  }
  func.func @transform_1(%arg0: i32) -> (i32, i32) {
    %c0_i32 = arith.constant 0 : i32
    %c0_i32_0 = arith.constant 0 : i32
    %c0_i32_1 = arith.constant 0 : i32
    return %c0_i32, %c0_i32_0 : i32, i32
  }
  func.func @transform_2(%arg0: i32) -> (i32, i32) {
    %c0_i32 = arith.constant 0 : i32
    %c0_i32_0 = arith.constant 0 : i32
    %c0_i32_1 = arith.constant 0 : i32
    return %c0_i32, %c0_i32_0 : i32, i32
  }
  func.func @transform_3(%arg0: i32) -> (i32, i32) {
    %c0_i32 = arith.constant 0 : i32
    %c0_i32_0 = arith.constant 0 : i32
    %c0_i32_1 = arith.constant 0 : i32
    return %c0_i32, %c0_i32_0 : i32, i32
  }
  func.func @transform_4(%arg0: i32) -> (i32, i32) {
    %c0_i32 = arith.constant 0 : i32
    %c0_i32_0 = arith.constant 0 : i32
    %c0_i32_1 = arith.constant 0 : i32
    return %c0_i32, %c0_i32_0 : i32, i32
  }
  func.func @transform_5(%arg0: i32) -> (i32, i32) {
    %c0_i32 = arith.constant 0 : i32
    %c0_i32_0 = arith.constant 0 : i32
    %c0_i32_1 = arith.constant 0 : i32
    return %c0_i32, %c0_i32_0 : i32, i32
  }
  func.func @transform_6(%arg0: i32) -> (i32, i32) {
    %c0_i32 = arith.constant 0 : i32
    %c0_i32_0 = arith.constant 0 : i32
    %c0_i32_1 = arith.constant 0 : i32
    return %c0_i32, %c0_i32_0 : i32, i32
  }
  func.func @transform_7(%arg0: i32) -> (i32, i32) {
    %c0_i32 = arith.constant 0 : i32
    %c0_i32_0 = arith.constant 0 : i32
    return %arg0, %c0_i32 : i32, i32
  }
}

</mosaic_0001>

<bundles_post_ra>
// kernel: tpu_custom_call.1
= control target key start
LH: loop header
LB: loop body
LE: loop exit
PB: predicated region body
PF: predicated region fallthrough
CT: control target
= control target key end

     0   :  { %12 = vsyncpa [#allocation3], 0  ;;  %s948_s0 = inlined_call_operand.vmem [shape: bf16[64,16], index: 0, kind: input, shape index: {}]   ;;  %s949_s1 = inlined_call_operand.vmem [shape: bf16[16,128], index: 1, kind: input, shape index: {}]   ;;  %s950_s2 = inlined_call_operand.vmem [shape: f32[1,128], index: 2, kind: input, shape index: {}]   ;;  %s951_s3 = inlined_call_operand.hbm [shape: bf16[128,128], index: 3, kind: input, shape index: {}]   ;;  %s952_s4 = inlined_call_operand.vmem [shape: f32[1,128], index: 4, kind: input, shape index: {}]   ;;  %s953_s5 = inlined_call_operand.hbm [shape: bf16[128,128], index: 5, kind: input, shape index: {}]   ;;  %s954_s6 = inlined_call_operand.vmem [shape: f32[1,128], index: 6, kind: input, shape index: {}]   ;;  %s955_s7 = inlined_call_operand.hbm [shape: f32[64,128], index: 7, kind: output, shape index: {}]  }
   0x1   :  { %13 = vsyncpa [#allocation6], 0 }
   0x2   :  { %14 = vsyncpa [#allocation4], 0  ;;  %s829_s24 = smov [#allocation2]   ;;  %s757_s28 = scalar_lea.hbm %s951_s3, 1024 }
   0x3   :  { %s26_s25 = sshll.u32 %s829_s24, 4  ;;  %p758_p0 = scmp.ne.s32.totalorder %s951_s3, %s757_s28  ;;  %s27_s25 = int_to_ptr.vmem [resolvable:$true] %s26_s25 }
   0x4   :  { %p761_p1 = scmp.lt.u32.totalorder %s757_s28, %s951_s3 }
   0x6   :  { %p763_p2 = pnand %p761_p1, %p758_p0 }
   0x8   :  { %766 = shalt.err (!%p763_p2)
}
   0x9   :  { %s767_s10 = scalar_lea.vmem %s27_s25, 1024  ;;  %p772_p4 = scmp.lt.s32.totalorder %s27_s25, %s27_s25 }
   0xa   :  { %p768_p3 = scmp.ne.s32.totalorder %s27_s25, %s767_s10  ;;  %p773_p5 = scmp.lt.s32.totalorder %s767_s10, %s767_s10 }
   0xc   :  { %p774_p6 = por %p773_p5, %p772_p4 }
   0xe   :  { %p775_p7 = pnand %p774_p6, %p768_p3 }
  0x10   :  { %778 = shalt.err (!%p775_p7)
}
  0x11   :  { %s830_s11 = smov 64   ;;  %s831_s12 = smov 4  }
  0x12   :  { %32 = dma.hbm_to_vmem [thread:$0]  %s951_s3, 1024, %s27_s25, [#allocation3], %s830_s11, %s830_s11, %s831_s12  }
  0x13   :  { %s832_s15 = smov [#allocation5]   ;;  %s779_s19 = scalar_lea.hbm %s953_s5, 1024 }
  0x14   :  { %s40_s16 = sshll.u32 %s832_s15, 4  ;;  %p780_p8 = scmp.ne.s32.totalorder %s953_s5, %s779_s19  ;;  %s41_s16 = int_to_ptr.vmem [resolvable:$true] %s40_s16 }
  0x15   :  { %p783_p9 = scmp.lt.u32.totalorder %s779_s19, %s953_s5 }
  0x17   :  { %p785_p10 = pnand %p783_p9, %p780_p8 }
  0x19   :  { %788 = shalt.err (!%p785_p10)
}
  0x1a   :  { %s789_s24 = scalar_lea.vmem %s41_s16, 1024  ;;  %p794_p12 = scmp.lt.s32.totalorder %s41_s16, %s41_s16 }
  0x1b   :  { %p790_p11 = scmp.ne.s32.totalorder %s41_s16, %s789_s24  ;;  %p795_p13 = scmp.lt.s32.totalorder %s789_s24, %s789_s24 }
  0x1d   :  { %p796_p0 = por %p795_p13, %p794_p12 }
  0x1f   :  { %p797_p1 = pnand %p796_p0, %p790_p11 }
  0x21   :  { %800 = shalt.err (!%p797_p1)
}
  0x22   :  { %46 = dma.hbm_to_vmem [thread:$0]  %s953_s5, 1024, %s41_s16, [#allocation6], %s830_s11, %s830_s11, %s831_s12  }
  0x23   :  { %823 = dma.done.wait [#allocation3], 1024  }
  0x24   :  { %824 = vsyncadd [#allocation3], 4294966272 }
  0x25   :  { %825 = dma.done.wait [#allocation6], 1024  }
  0x26   :  { %826 = vsyncadd [#allocation6], 4294966272  ;;  %v704_v0 = vld [vmem:[%s949_s1] sm:$0xff]   ;;  %vm99_vm0 = vcmask 130048   ;;  %v706_v2 = vld [vmem:[%s948_s0 + $0x8] sm:$0xff]  }
  0x27   :  { %v705_v1 = vld [vmem:[%s948_s0] sm:$0xff]   ;;  %639 = vmatprep.subr.bf16.mxu0 %v704_v0  ;;  %v707_v3 = vld [vmem:[%s948_s0 + $0x10] sm:$0xff]   ;;  %v710_v5 = vld [vmem:[#allocation2 + $0x8] sm:$0xff]  }
  0x28   :  { %640 = vmatpush3.bf16.msra.mxu0 %v704_v0  ;;  %641 = vmatprep.mubr.msk.bf16.mxu0 %vm99_vm0, %v705_v1  ;;  %v709_v4 = vld [vmem:[#allocation2] sm:$0xff]   ;;  %v711_v6 = vld [vmem:[#allocation2 + $0x10] sm:$0xff]   ;;  %v708_v7 = vld [vmem:[%s948_s0 + $0x18] sm:$0xff]  }
  0x29   :  { %649 = vmatprep.subr.bf16.mxu1 %v709_v4  ;;  %v712_v8 = vld [vmem:[#allocation2 + $0x18] sm:$0xff]   ;;  %v713_v9 = vld [vmem:[#allocation2 + $0x20] sm:$0xff]   ;;  %v714_v10 = vld [vmem:[#allocation2 + $0x28] sm:$0xff]  }
  0x2a   :  { %650 = vmatpush3.bf16.msra.mxu1 %v709_v4  ;;  %v715_v11 = vld [vmem:[#allocation2 + $0x30] sm:$0xff]   ;;  %v716_v12 = vld [vmem:[#allocation2 + $0x38] sm:$0xff]   ;;  %v717_v13 = vld [vmem:[#allocation5] sm:$0xff]  }
  0x2b   :  { %642 = vmatmul.mubr.msk.bf16.vlgmr.msra.gmra.mrb[0].mxu0 %vm99_vm0, %v706_v2  ;;  %651 = vmatprep.subr.bf16.mxu1 %v710_v5  ;;  %v718_v14 = vld [vmem:[#allocation5 + $0x8] sm:$0xff]   ;;  %v719_v15 = vld [vmem:[#allocation5 + $0x10] sm:$0xff]   ;;  %v720_v16 = vld [vmem:[#allocation5 + $0x18] sm:$0xff]  }
  0x2c   :  { %645 = vmatprep.mubr.msk.bf16.mxu0 %vm99_vm0, %v707_v3  ;;  %673 = vmatprep.subr.bf16.mxu0 %v717_v13  ;;  %v721_v17 = vld [vmem:[#allocation5 + $0x20] sm:$0xff]   ;;  %v722_v18 = vld [vmem:[#allocation5 + $0x28] sm:$0xff]   ;;  %v723_v48 = vld [vmem:[#allocation5 + $0x30] sm:$0xff]  }
  0x2d   :  { %674 = vmatpush3.bf16.msra.mxu0 %v717_v13  ;;  %v582_v19 = vld [vmem:[%s950_s2] ss:$0 sm:$0xff]  ;;  %v724_v49 = vld [vmem:[#allocation5 + $0x38] sm:$0xff]  }
  0x2e   :  { %652 = vmatpush3.bf16.msra.mxu1 %v710_v5  ;;  %675 = vmatprep.subr.bf16.mxu0 %v718_v14  ;;  %v592_v50 = vld [vmem:[%s952_s4] ss:$0 sm:$0xff] }
  0x2f   :  { %653 = vmatprep.subr.bf16.mxu1 %v711_v6 }
  0x31   :  { %676 = vmatpush3.bf16.msra.mxu0 %v718_v14 }
  0x32   :  { %654 = vmatpush3.bf16.msra.mxu1 %v711_v6  ;;  %677 = vmatprep.subr.bf16.mxu0 %v719_v15 }
  0x33   :  { %646 = vmatmul.mubr.msk.bf16.gmra.mrb[4].mxu0 %vm99_vm0, %v708_v7  ;;  %655 = vmatprep.subr.bf16.mxu1 %v712_v8 }
  0x35   :  { %678 = vmatpush3.bf16.msra.mxu0 %v719_v15  ;;  %v473_v15 = vlaneseq }
  0x36   :  { %656 = vmatpush3.bf16.msra.mxu1 %v712_v8  ;;  %679 = vmatprep.subr.bf16.mxu0 %v720_v16 }
  0x37   :  { %657 = vmatprep.subr.bf16.mxu1 %v713_v9 }
  0x39   :  { %680 = vmatpush3.bf16.msra.mxu0 %v720_v16  ;;  %v474_v16 = vand.u32 127, %v473_v15 }
  0x3a   :  { %658 = vmatpush3.bf16.msra.mxu1 %v713_v9  ;;  %681 = vmatprep.subr.bf16.mxu0 %v721_v17 }
  0x3b   :  { %659 = vmatprep.subr.bf16.mxu1 %v714_v10  ;;  %vm475_vm1 = vcmp.lt.s32.totalorder %v474_v16, 6 }
  0x3d   :  { %682 = vmatpush3.bf16.msra.mxu0 %v721_v17  ;;  %v601_v17 = vld [vmem:[%s954_s6] ss:$0 sm:$0xff]  ;;  %s833_s6 = smov [#allocation7]  }
  0x3e   :  { %660 = vmatpush3.bf16.msra.mxu1 %v714_v10  ;;  %683 = vmatprep.subr.bf16.mxu0 %v722_v18  ;;  %s569_s14 = sshll.u32 %s833_s6, 4  ;;  %s570_s14 = int_to_ptr.vmem [resolvable:$true] %s569_s14 }
  0x3f   :  { %661 = vmatprep.subr.bf16.mxu1 %v715_v11  ;;  %s801_s15 = scalar_lea.vmem %s570_s14, 1024  ;;  %p806_p3 = scmp.lt.s32.totalorder %s570_s14, %s570_s14 }
  0x40   :  { %p802_p2 = scmp.ne.s32.totalorder %s570_s14, %s801_s15  ;;  %p807_p4 = scmp.lt.s32.totalorder %s801_s15, %s801_s15 }
  0x41   :  { %684 = vmatpush3.bf16.msra.mxu0 %v722_v18 }
  0x42   :  { %662 = vmatpush3.bf16.msra.mxu1 %v715_v11  ;;  %685 = vmatprep.subr.bf16.mxu0 %v723_v48  ;;  %p808_p5 = por %p807_p4, %p806_p3 }
  0x43   :  { %663 = vmatprep.subr.bf16.mxu1 %v716_v12 }
  0x44   :  { %p809_p6 = pnand %p808_p5, %p802_p2 }
  0x45   :  { %686 = vmatpush3.bf16.msra.mxu0 %v723_v48 }
  0x46   :  { %664 = vmatpush3.bf16.msra.mxu1 %v716_v12  ;;  %687 = vmatprep.subr.bf16.mxu0 %v724_v49 }
  0x49   :  { %688 = vmatpush3.bf16.msra.mxu0 %v724_v49 }
  0xfe   :  { %v643_v20 = vpop.f32.mrb[0].mxu0 }
  0xff   :  { %v155_v21 = vadd.f32 %v643_v20, %v582_v19  ;;  %v146_v22 = vpop.f32.mrb[1].mxu0 }
 0x100   :  { %v147_v23 = vadd.f32 %v582_v19, %v146_v22  ;;  %v644_v24 = vpop.f32.mrb[2].mxu0 }
 0x101   :  { %v158_v25 = vadd.f32 %v644_v24, %v582_v19  ;;  %v149_v26 = vpop.f32.mrb[3].mxu0  ;;  %v179_v28 = vmax.f32 %v155_v21, 0.0 }
 0x102   :  { %v150_v27 = vadd.f32 %v582_v19, %v149_v26  ;;  %v177_v30 = vmax.f32 %v147_v23, 0.0 }
 0x103   :  { %v180_v29 = vmax.f32 %v158_v25, 0.0 }
 0x104   :  { %v178_v31 = vmax.f32 %v150_v27, 0.0 }
 0x105   :  { %v186_v32 = vpack.c.bf16 %v180_v29, %v179_v28 }
 0x106   :  { %v647_v33 = vpop.f32.mrb[4].mxu0  ;;  %v185_v34 = vpack.c.bf16 %v178_v31, %v177_v30 }
 0x107   :  { %v171_v35 = vadd.f32 %v647_v33, %v582_v19  ;;  %v162_v36 = vpop.f32.mrb[5].mxu0 }
 0x108   :  { %v163_v37 = vadd.f32 %v582_v19, %v162_v36  ;;  %v648_v38 = vpop.f32.mrb[6].mxu0  ;;  %665 = vmatprep.mubr.bf16.mxu1 %v185_v34 }
 0x109   :  { %v183_v39 = vmax.f32 %v171_v35, 0.0  ;;  %v174_v40 = vadd.f32 %v648_v38, %v582_v19  ;;  %v165_v41 = vpop.f32.mrb[7].mxu0  ;;  %666 = vmatmul.mubr.bf16.vlgmr.msra.gmra.mrb[0].mxu1 %v186_v32 }
 0x10a   :  { %v166_v42 = vadd.f32 %v582_v19, %v165_v41  ;;  %v181_v44 = vmax.f32 %v163_v37, 0.0 }
 0x10b   :  { %v184_v43 = vmax.f32 %v174_v40, 0.0 }
 0x10c   :  { %v182_v45 = vmax.f32 %v166_v42, 0.0 }
 0x10d   :  { %v188_v46 = vpack.c.bf16 %v184_v43, %v183_v39 }
 0x10e   :  { %v187_v47 = vpack.c.bf16 %v182_v45, %v181_v44 }
 0x110   :  { %669 = vmatprep.mubr.bf16.mxu1 %v187_v47 }
 0x111   :  { %670 = vmatmul.mubr.bf16.gmra.mrb[4].mxu1 %v188_v46 }
 0x1dc   :  { %v667_v51 = vpop.f32.mrb[0].mxu1 }
 0x1dd   :  { %v303_v52 = vadd.f32 %v667_v51, %v592_v50  ;;  %v294_v53 = vpop.f32.mrb[1].mxu1 }
 0x1de   :  { %v295_v54 = vadd.f32 %v592_v50, %v294_v53  ;;  %v668_v55 = vpop.f32.mrb[2].mxu1 }
 0x1df   :  { %v306_v56 = vadd.f32 %v668_v55, %v592_v50  ;;  %v297_v57 = vpop.f32.mrb[3].mxu1  ;;  %v327_v59 = vmax.f32 %v303_v52, 0.0 }
 0x1e0   :  { %v298_v58 = vadd.f32 %v592_v50, %v297_v57  ;;  %v325_v61 = vmax.f32 %v295_v54, 0.0 }
 0x1e1   :  { %v328_v60 = vmax.f32 %v306_v56, 0.0 }
 0x1e2   :  { %v326_v62 = vmax.f32 %v298_v58, 0.0 }
 0x1e3   :  { %v334_v63 = vpack.c.bf16 %v328_v60, %v327_v59 }
 0x1e4   :  { %v333_v0 = vpack.c.bf16 %v326_v62, %v325_v61  ;;  %v671_v1 = vpop.f32.mrb[4].mxu1 }
 0x1e5   :  { %v319_v2 = vadd.f32 %v671_v1, %v592_v50  ;;  %v310_v3 = vpop.f32.mrb[5].mxu1 }
 0x1e6   :  { %v311_v4 = vadd.f32 %v592_v50, %v310_v3  ;;  %v672_v5 = vpop.f32.mrb[6].mxu1  ;;  %689 = vmatprep.mubr.bf16.mxu0 %v333_v0 }
 0x1e7   :  { %v322_v6 = vadd.f32 %v672_v5, %v592_v50  ;;  %v313_v7 = vpop.f32.mrb[7].mxu1  ;;  %690 = vmatmul.mubr.bf16.vlgmr.msra.gmra.mrb[8].mxu0 %v334_v63  ;;  %v331_v9 = vmax.f32 %v319_v2, 0.0 }
 0x1e8   :  { %v314_v8 = vadd.f32 %v592_v50, %v313_v7  ;;  %v329_v11 = vmax.f32 %v311_v4, 0.0 }
 0x1e9   :  { %v332_v10 = vmax.f32 %v322_v6, 0.0 }
 0x1ea   :  { %v330_v12 = vmax.f32 %v314_v8, 0.0 }
 0x1eb   :  { %v336_v13 = vpack.c.bf16 %v332_v10, %v331_v9 }
 0x1ec   :  { %v335_v14 = vpack.c.bf16 %v330_v12, %v329_v11 }
 0x1ee   :  { %693 = vmatprep.mubr.bf16.mxu0 %v335_v14 }
 0x1ef   :  { %694 = vmatmul.mubr.bf16.gmra.mrb[12].mxu0 %v336_v13 }
 0x2ba   :  { %v691_v18 = vpop.f32.mrb[8].mxu0 }
 0x2bb   :  { %v451_v19 = vadd.f32 %v691_v18, %v601_v17  ;;  %v442_v20 = vpop.f32.mrb[9].mxu0 }
 0x2bc   :  { %v443_v21 = vadd.f32 %v601_v17, %v442_v20  ;;  %v692_v22 = vpop.f32.mrb[10].mxu0 }
 0x2bd   :  { %v454_v23 = vadd.f32 %v692_v22, %v601_v17  ;;  %v445_v24 = vpop.f32.mrb[11].mxu0  ;;  %v478_v25 = vsel %vm475_vm1, %v451_v19, -inf }
 0x2be   :  { %v446_v26 = vadd.f32 %v601_v17, %v445_v24  ;;  %488 = vmax.xlane.f32.xlu1 %v478_v25  ;;  %v476_v27 = vsel %vm475_vm1, %v443_v21, -inf }
 0x2bf   :  { %484 = vmax.xlane.f32.xlu0 %v476_v27  ;;  %v479_v28 = vsel %vm475_vm1, %v454_v23, -inf }
 0x2c0   :  { %v477_v30 = vsel %vm475_vm1, %v446_v26, -inf }
 0x2c2   :  { %490 = vmax.xlane.f32.xlu1 %v479_v28  ;;  %v695_v29 = vpop.f32.mrb[12].mxu0 }
 0x2c3   :  { %v458_v31 = vpop.f32.mrb[13].mxu0  ;;  %486 = vmax.xlane.f32.xlu0 %v477_v30  ;;  %v467_v35 = vadd.f32 %v695_v29, %v601_v17 }
 0x2c4   :  { %v459_v32 = vadd.f32 %v601_v17, %v458_v31  ;;  %v696_v33 = vpop.f32.mrb[14].mxu0 }
 0x2c5   :  { %v461_v34 = vpop.f32.mrb[15].mxu0  ;;  %v470_v38 = vadd.f32 %v696_v33, %v601_v17  ;;  %v482_v40 = vsel %vm475_vm1, %v467_v35, -inf }
 0x2c6   :  { %v462_v36 = vadd.f32 %v601_v17, %v461_v34  ;;  %v480_v37 = vsel %vm475_vm1, %v459_v32, -inf }
 0x2c7   :  { %492 = vmax.xlane.f32.xlu0 %v480_v37  ;;  %v483_v41 = vsel %vm475_vm1, %v470_v38, -inf }
 0x2c8   :  { %v481_v39 = vsel %vm475_vm1, %v462_v36, -inf }
 0x2c9   :  { %494 = vmax.xlane.f32.xlu1 %v481_v39 }
 0x2cb   :  { %496 = vmax.xlane.f32.xlu0 %v482_v40 }
 0x2cd   :  { %498 = vmax.xlane.f32.xlu1 %v483_v41 }
 0x34b   :  { %v489_v42 = vpop.xlane.xlu1 %488 }
 0x34c   :  { %v502_v43 = vsub.f32 %v478_v25, %v489_v42  ;;  %v485_v44 = vpop.xlane.xlu0 %484 }
 0x34d   :  { %v500_v45 = vsub.f32 %v476_v27, %v485_v44 }
 0x34e   :  { %v512_v46 = vmul.f32 1.442695, %v502_v43 }
 0x34f   :  { %v508_v47 = vmul.f32 1.442695, %v500_v45  ;;  %v491_v48 = vpop.xlane.xlu1 %490 }
 0x350   :  { %725 = vpow2.f32 %v512_v46  ;;  %v503_v49 = vsub.f32 %v479_v28, %v491_v48  ;;  %v487_v50 = vpop.xlane.xlu0 %486 }
 0x351   :  { %v501_v51 = vsub.f32 %v477_v30, %v487_v50  ;;  %727 = vpow2.f32 %v508_v47 }
 0x352   :  { %v514_v52 = vmul.f32 1.442695, %v503_v49 }
 0x353   :  { %v510_v53 = vmul.f32 1.442695, %v501_v51 }
 0x354   :  { %729 = vpow2.f32 %v514_v52  ;;  %v493_v54 = vpop.xlane.xlu0 %492 }
 0x355   :  { %v504_v55 = vsub.f32 %v480_v37, %v493_v54  ;;  %731 = vpow2.f32 %v510_v53 }
 0x356   :  { %v495_v56 = vpop.xlane.xlu1 %494 }
 0x357   :  { %v516_v57 = vmul.f32 1.442695, %v504_v55  ;;  %v505_v58 = vsub.f32 %v481_v39, %v495_v56 }
 0x358   :  { %v497_v59 = vpop.xlane.xlu0 %496 }
 0x359   :  { %733 = vpow2.f32 %v516_v57  ;;  %v518_v60 = vmul.f32 1.442695, %v505_v58  ;;  %v506_v61 = vsub.f32 %v482_v40, %v497_v59 }
 0x35a   :  { %v726_v62 = vpop.eup %725  ;;  %v499_v63 = vpop.xlane.xlu1 %498 }
 0x35b   :  { %735 = vpow2.f32 %v518_v60  ;;  %v520_v0 = vmul.f32 1.442695, %v506_v61  ;;  %v507_v1 = vsub.f32 %v483_v41, %v499_v63  ;;  %528 = vadd.xlane.f32.xlu0 %v726_v62  ;;  %v728_v2 = vpop.eup %727 }
 0x35d   :  { %737 = vpow2.f32 %v520_v0  ;;  %v522_v3 = vmul.f32 1.442695, %v507_v1 }
 0x35e   :  { %v730_v4 = vpop.eup %729 }
 0x35f   :  { %739 = vpow2.f32 %v522_v3  ;;  %530 = vadd.xlane.f32.xlu1 %v730_v4  ;;  %524 = vadd.xlane.f32.xlu0 %v728_v2  ;;  %v732_v5 = vpop.eup %731 }
 0x363   :  { %v734_v6 = vpop.eup %733  ;;  %526 = vadd.xlane.f32.xlu1 %v732_v5 }
 0x364   :  { %532 = vadd.xlane.f32.xlu0 %v734_v6 }
 0x365   :  { %v736_v7 = vpop.eup %735 }
 0x367   :  { %v738_v8 = vpop.eup %737  ;;  %534 = vadd.xlane.f32.xlu1 %v736_v7 }
 0x368   :  { %536 = vadd.xlane.f32.xlu0 %v738_v8 }
 0x369   :  { %v740_v9 = vpop.eup %739 }
 0x36b   :  { %538 = vadd.xlane.f32.xlu1 %v740_v9 }
 0x3e8   :  { %v529_v10 = vpop.xlane.xlu0 %528 }
 0x3e9   :  { %741 = vrcp.f32 %v529_v10 }
 0x3ec   :  { %v531_v11 = vpop.xlane.xlu1 %530  ;;  %v525_v12 = vpop.xlane.xlu0 %524 }
 0x3ed   :  { %743 = vrcp.f32 %v531_v11 }
 0x3ee   :  { %745 = vrcp.f32 %v525_v12 }
 0x3f0   :  { %v527_v13 = vpop.xlane.xlu1 %526 }
 0x3f1   :  { %747 = vrcp.f32 %v527_v13  ;;  %v533_v14 = vpop.xlane.xlu0 %532 }
 0x3f2   :  { %749 = vrcp.f32 %v533_v14 }
 0x3f3   :  { %v742_v15 = vpop.eup %741 }
 0x3f4   :  { %v550_v16 = vmul.f32 %v742_v15, %v726_v62  ;;  %v535_v17 = vpop.xlane.xlu1 %534 }
 0x3f5   :  { %751 = vrcp.f32 %v535_v17  ;;  %v537_v18 = vpop.xlane.xlu0 %536 }
 0x3f6   :  { %558 = vst [vmem:[#allocation7 + $0x10] sm:$0xff] %v550_v16  ;;  %753 = vrcp.f32 %v537_v18 }
 0x3f7   :  { %v744_v19 = vpop.eup %743 }
 0x3f8   :  { %v746_v20 = vpop.eup %745  ;;  %v551_v21 = vmul.f32 %v744_v19, %v730_v4  ;;  %v539_v22 = vpop.xlane.xlu1 %538 }
 0x3f9   :  { %v548_v23 = vmul.f32 %v746_v20, %v728_v2  ;;  %755 = vrcp.f32 %v539_v22 }
 0x3fa   :  { %559 = vst [vmem:[#allocation7 + $0x18] sm:$0xff] %v551_v21 }
 0x3fb   :  { %v748_v24 = vpop.eup %747  ;;  %556 = vst [vmem:[#allocation7] sm:$0xff] %v548_v23 }
 0x3fc   :  { %v750_v25 = vpop.eup %749  ;;  %v549_v26 = vmul.f32 %v748_v24, %v732_v5 }
 0x3fd   :  { %v552_v27 = vmul.f32 %v750_v25, %v734_v6 }
 0x3fe   :  { %557 = vst [vmem:[#allocation7 + $0x8] sm:$0xff] %v549_v26 }
 0x3ff   :  { %v752_v28 = vpop.eup %751  ;;  %560 = vst [vmem:[#allocation7 + $0x20] sm:$0xff] %v552_v27 }
 0x400   :  { %v754_v29 = vpop.eup %753  ;;  %v553_v30 = vmul.f32 %v752_v28, %v736_v7 }
 0x401   :  { %v554_v31 = vmul.f32 %v754_v29, %v738_v8 }
 0x402   :  { %561 = vst [vmem:[#allocation7 + $0x28] sm:$0xff] %v553_v30 }
 0x403   :  { %v756_v32 = vpop.eup %755  ;;  %562 = vst [vmem:[#allocation7 + $0x30] sm:$0xff] %v554_v31 }
 0x404   :  { %v555_v33 = vmul.f32 %v756_v32, %v740_v9 }
 0x406   :  { %563 = vst [vmem:[#allocation7 + $0x38] sm:$0xff] %v555_v33 }
 0x407   :  { %812 = shalt.err (!%p809_p6)
}
 0x408   :  { %s813_s18 = scalar_lea.hbm %s955_s7, 1024 }
 0x409   :  { %p814_p7 = scmp.ne.s32.totalorder %s955_s7, %s813_s18  ;;  %p817_p8 = scmp.lt.u32.totalorder %s813_s18, %s955_s7 }
 0x40b   :  { %p819_p9 = pnand %p817_p8, %p814_p7 }
 0x40d   :  { %822 = shalt.err (!%p819_p9)
}
 0x40e   :  { %s834_s23 = smov 128   ;;  %s835_s24 = smov 8  }
 0x40f   :  { %575 = dma.vmem_to_hbm [thread:$0]  %s570_s14, 1024, %s955_s7, [#allocation4], %s834_s23, %s834_s23, %s835_s24  }
 0x410   :  { %827 = dma.done.wait [#allocation4], 1024  }
 0x411   :  { %828 = vsyncadd [#allocation4], 4294966272 }
 0x412   :  { %579 = vsyncpa [#allocation3], 1 }
 0x413   :  { %580 = vsyncpa [#allocation6], 1 }
 0x414   :  { %581 = vsyncpa [#allocation4], 1 }

</bundles_post_ra>
